<compile_context>
chip_gen: v7x
topology: tpu7x:2x2x1
jax: 0.10.0
libtpu: 0.0.40
codegen_flags: <defaults>
</compile_context>

<pallas_src>
import jax
import jax.numpy as jnp
from jax.experimental import pallas as pl
from jax.experimental.pallas import tpu as pltpu


def _round_up(v, m):
    return (v + m - 1) // m * m


def _cdiv(a, b):
    return (a + b - 1) // b


_W_RESIDENT_BUDGET = 8 << 20   # single-buffered, grid-invariant W (bf16 bytes)
_W_TILE_BUDGET = 4 << 20       # per-tile W budget when N-tiling (double-buffered)


def _choose_tn(Dp):
    """Feature-axis tile: full width if the bf16 weight fits resident, else tile."""
    if Dp * Dp * 2 <= _W_RESIDENT_BUDGET:
        return Dp
    tn = Dp
    while tn > 128:
        tn -= 128
        if Dp % tn == 0 and Dp * tn * 2 <= _W_TILE_BUDGET:
            return tn
    return 128


def _choose_tm(Mp, Dp, itemsize):
    """Batch tile: ~1 MiB x tiles, but keep >= 2 grid steps when possible."""
    rows = max(256, (1 << 20) // max(Dp * itemsize, 1))
    tm = min(rows, Mp)
    if Mp >= 16:
        tm = min(tm, _cdiv(Mp, 2))   # >= 2 steps: megacore split + pipeline depth
    return max(8, _round_up(tm, 8))


def _context_gating_kernel(x_ref, w_ref, b_ref, o_ref):
    # x: (TM, Dp) activation dtype; w: (Dp, TN) bf16 (pre-transposed, y = x@w+b);
    # b: (1, TN) f32; out: (TM, TN) activation dtype.
    x = x_ref[...]

    # bf16 MXU matmul with f32 accumulation.
    y = jnp.dot(x.astype(jnp.bfloat16), w_ref[...],
                preferred_element_type=jnp.float32) + b_ref[...]

    # sigmoid(y) = 1 / (1 + exp(-y)); exp and approx reciprocal both hit the EUP.
    s = pl.reciprocal(1.0 + jnp.exp(-y), approx=True)

    tn = o_ref.shape[-1]
    if tn == x_ref.shape[-1]:
        xg = x
    else:
        col = pl.multiple_of(pl.program_id(1) * tn, 128)
        xg = x_ref[:, pl.ds(col, tn)]

    o_ref[...] = (xg.astype(jnp.float32) * s).astype(o_ref.dtype)


def context_gating(x, weight, bias):
    """Context_Gating forward (add_batch_norm=False).

    x: (B, D) activations; weight: (D, D) torch nn.Linear layout (out, in);
    bias: (D,).  Returns (B, D) in x.dtype.
    """
    B, D = x.shape
    out_dtype = x.dtype

    Dp = _round_up(D, 128)
    fast = (D % 128 == 0) and (B % 8 == 0)

    # Weight stored transposed (y = x @ Wt + b) and cast to bf16 for the MXU.
    # TODO(synk): cache the transposed/cast weight across calls when it is static.
    w_t = jnp.asarray(weight).T.astype(jnp.bfloat16)
    b_r = jnp.asarray(bias).reshape(1, D).astype(jnp.float32)

    if fast:
        # Zero-copy path: activations stream straight from/to HBM, lane-dense.
        x_p, w_p, b_p, Mp = x, w_t, b_r, B
    else:
        # Fallback: pad features to a lane-dense multiple of 128 and rows to 8.
        # Zero-padded x columns / W columns / bias give exactly-zero outputs.
        Mp = _round_up(B, 8)
        x_p = jnp.zeros((Mp, Dp), x.dtype).at[:B, :D].set(x)
        w_p = jnp.zeros((Dp, Dp), jnp.bfloat16).at[:D, :D].set(w_t)
        b_p = jnp.zeros((1, Dp), jnp.float32).at[:, :D].set(b_r)

    TN = _choose_tn(Dp)
    n_tiles = Dp // TN
    TM = _choose_tm(Mp, Dp, jnp.dtype(x.dtype).itemsize)
    m_tiles = _cdiv(Mp, TM)

    if n_tiles == 1:
        # Grid-invariant weight/bias: single-buffer to halve their VMEM use.
        w_spec = pl.BlockSpec((Dp, TN), lambda i, j: (0, j),
                              pipeline_mode=pl.Buffered(1))
        b_spec = pl.BlockSpec((1, TN), lambda i, j: (0, j),
                              pipeline_mode=pl.Buffered(1))
    else:
        # Feature-tiled weight changes per step; keep default double-buffering.
        w_spec = pl.BlockSpec((Dp, TN), lambda i, j: (0, j))
        b_spec = pl.BlockSpec((1, TN), lambda i, j: (0, j))

    out = pl.pallas_call(
        _context_gating_kernel,
        out_shape=jax.ShapeDtypeStruct((Mp, Dp), out_dtype),
        grid_spec=pltpu.PrefetchScalarGridSpec(
            num_scalar_prefetch=0,
            grid=(m_tiles, n_tiles),
            in_specs=[
                pl.BlockSpec((TM, Dp), lambda i, j: (i, 0)),   # x streams over M
                w_spec,                                        # weight (resident)
                b_spec,                                        # bias
            ],
            out_specs=pl.BlockSpec((TM, TN), lambda i, j: (i, j)),
        ),
        compiler_params=pltpu.CompilerParams(
            dimension_semantics=("parallel", "arbitrary"),
        ),
    )(x_p, w_p, b_p)

    if fast:
        return out
    return out[:B, :D]


def _reference(x, weight, bias):
    x = x.astype(jnp.float32)
    y = x @ weight.astype(jnp.float32).T + bias.astype(jnp.float32)
    return x * jax.nn.sigmoid(y)


if __name__ == "__main__":
    # Small, module-consistent shapes: Context_Gating(dimension=32) on (64, 32).
    key = jax.random.PRNGKey(0)
    k_x, k_w, k_b = jax.random.split(key, 3)

    B, D = 64, 32
    x = jax.random.normal(k_x, (B, D), dtype=jnp.float32)
    weight = 0.1 * jax.random.normal(k_w, (D, D), dtype=jnp.float32)
    bias = 0.1 * jax.random.normal(k_b, (D,), dtype=jnp.float32)

    fn = jax.jit(context_gating)
    out = jax.block_until_ready(fn(x, weight, bias))

    ref = _reference(x, weight, bias)
    assert out.shape == ref.shape == (B, D)
    assert out.dtype == x.dtype
    err = jnp.max(jnp.abs(out.astype(jnp.float32) - ref))
    assert err < 3e-2, f"mismatch vs reference: {err}"

    print("KERNEL_OK")
</pallas_src>

<mosaic_0001>
module attributes {stable_mosaic.version = 11 : i64} {
  func.func @_context_gating_kernel(%arg0: i32, %arg1: i32, %arg2: memref<32x128xf32, #tpu.memory_space<vmem>>, %arg3: memref<128x128xbf16, #tpu.memory_space<vmem>>, %arg4: memref<1x128xf32, #tpu.memory_space<vmem>>, %arg5: memref<32x128xf32, #tpu.memory_space<vmem>>) attributes {dimension_semantics = [#tpu.dimension_semantics<parallel>, #tpu.dimension_semantics<arbitrary>], iteration_bounds = array<i64: 2, 1>, scalar_prefetch = 0 : i64, scratch_operands = 0 : i64, tpu.core_type = #tpu.core_type<tc>, window_params = [{transform_indices = @transform_0, window_bounds = array<i64: 32, 128>}, {pipeline_mode = #tpu.pipeline_mode<synchronous>, transform_indices = @transform_1, window_bounds = array<i64: 128, 128>}, {pipeline_mode = #tpu.pipeline_mode<synchronous>, transform_indices = @transform_2, window_bounds = array<i64: 1, 128>}, {transform_indices = @transform_3, window_bounds = array<i64: 32, 128>}]} {
    %c0 = arith.constant 0 : index
    %c0_0 = arith.constant 0 : index
    %0 = vector.load %arg2[%c0, %c0_0] : memref<32x128xf32, #tpu.memory_space<vmem>>, vector<32x128xf32>
    %1 = arith.truncf %0 : vector<32x128xf32> to vector<32x128xbf16>
    %c0_1 = arith.constant 0 : index
    %c0_2 = arith.constant 0 : index
    %2 = vector.load %arg3[%c0_1, %c0_2] : memref<128x128xbf16, #tpu.memory_space<vmem>>, vector<128x128xbf16>
    %cst = arith.constant dense<0.000000e+00> : vector<32x128xf32>
    %3 = tpu.matmul %1, %2, %cst {dimension_numbers = #tpu.dot_dimension_numbers<[1], [0], [0], [1], [0, 0, 1, 1], [], []>} : vector<32x128xbf16>, vector<128x128xbf16>, vector<32x128xf32> -> vector<32x128xf32>
    %c0_3 = arith.constant 0 : index
    %c0_4 = arith.constant 0 : index
    %4 = vector.load %arg4[%c0_3, %c0_4] : memref<1x128xf32, #tpu.memory_space<vmem>>, vector<1x128xf32>
    %5 = vector.broadcast %4 : vector<1x128xf32> to vector<32x128xf32>
    %6 = arith.addf %3, %5 : vector<32x128xf32>
    %cst_5 = arith.constant 0.000000e+00 : f32
    %7 = vector.broadcast %cst_5 : f32 to vector<32x128xf32>
    %8 = arith.subf %7, %6 : vector<32x128xf32>
    %9 = math.exp %8 : vector<32x128xf32>
    %cst_6 = arith.constant 1.000000e+00 : f32
    %10 = vector.broadcast %cst_6 : f32 to vector<32x128xf32>
    %11 = arith.addf %10, %9 : vector<32x128xf32>
    %12 = tpu.reciprocal %11 {approx = true} : vector<32x128xf32> -> vector<32x128xf32>
    %13 = arith.mulf %0, %12 : vector<32x128xf32>
    %c0_7 = arith.constant 0 : index
    %c0_8 = arith.constant 0 : index
    %14 = vector.load %arg5[%c0_7, %c0_8] : memref<32x128xf32, #tpu.memory_space<vmem>>, vector<32x128xf32>
    tpu.vector_store %arg5[%c0_7, %c0_8], %13 {strides = array<i32>} : memref<32x128xf32, #tpu.memory_space<vmem>>, vector<32x128xf32>,
    return
  }
  func.func @transform_0(%arg0: i32, %arg1: i32) -> (i32, i32) {
    %c0_i32 = arith.constant 0 : i32
    %c0_i32_0 = arith.constant 0 : i32
    return %arg0, %c0_i32 : i32, i32
  }
  func.func @transform_1(%arg0: i32, %arg1: i32) -> (i32, i32) {
    %c0_i32 = arith.constant 0 : i32
    %c0_i32_0 = arith.constant 0 : i32
    return %c0_i32, %arg1 : i32, i32
  }
  func.func @transform_2(%arg0: i32, %arg1: i32) -> (i32, i32) {
    %c0_i32 = arith.constant 0 : i32
    %c0_i32_0 = arith.constant 0 : i32
    return %c0_i32, %arg1 : i32, i32
  }
  func.func @transform_3(%arg0: i32, %arg1: i32) -> (i32, i32) {
    %c0_i32 = arith.constant 0 : i32
    return %arg0, %arg1 : i32, i32
  }
}

</mosaic_0001>

<bundles_post_ra>
// kernel: context_gating.1
= control target key start
LH: loop header
LB: loop body
LE: loop exit
PB: predicated region body
PF: predicated region fallthrough
CT: control target
= control target key end

     0   :  { %s626_s12 = smov 0   ;;  %s628_s13 = smov 0   ;;  %s693_s0 = inlined_call_operand.vmem [shape: f32[64,128], index: 0, kind: input, shape index: {}]   ;;  %s694_s1 = inlined_call_operand.vmem [shape: bf16[128,128], index: 1, kind: input, shape index: {}]   ;;  %s695_s2 = inlined_call_operand.vmem [shape: f32[1,128], index: 2, kind: input, shape index: {}]   ;;  %s696_s3 = inlined_call_operand.vmem [shape: f32[64,128], index: 3, kind: output, shape index: {}]  }
   0x1   :  { %s630_s14 = smov 0  }
   0x2 LB: > { %s25_s15 = sadd.s32 1, %s600_s13  ;;  %p488_p0 = scmp.ge.s32.totalorder %s604_s14, 1  ;;  %s604_s14 = sphi %s630_s14, %s13_s14   ;;  %s600_s13 = sphi %s628_s13, %s698_s13   ;;  %s596_s12 = sphi %s626_s12, %s697_s12  }
   0x3   : > { %p27_p1 = scmp.ge.s32.totalorder %s25_s15, 2  ;;  %p169_p2 = scmp.lt.s32.totalorder %s604_s14, 3 }
   0x5   : > { %s700_s15 = smov (%p27_p1, %s25_s15), 0  ;;  %p170_p3 = pnand %p488_p0, %p169_p2 }
   0x6   : > { %v558_v0 = vld [vmem:[%s694_s1] sm:$0xff] (!%p170_p3)   ;;  %s489_s18 = sshll.u32 (!%p170_p3), %s596_s12, 2  ;;  %v559_v1 = vld [vmem:[%s694_s1 + $0x8] sm:$0xff] (!%p170_p3)   ;;  %v560_v2 = vld [vmem:[%s694_s1 + $0x10] sm:$0xff] (!%p170_p3)  }
   0x7   : > { %173 = sbr.rel (%p170_p3) target bundleno = 287 (0x11f), region = 32  ;;  %p204_p4 = scmp.lt.s32.totalorder (!%p170_p3), %s489_s18, 7  ;;  %514 = vmatprep.subr.bf16.mxu0 (!%p170_p3), %v558_v0  ;;  %v561_v3 = vld [vmem:[%s694_s1 + $0x18] sm:$0xff] (!%p170_p3)   ;;  %v562_v7 = vld [vmem:[%s694_s1 + $0x20] sm:$0xff] (!%p170_p3)   ;;  %v563_v8 = vld [vmem:[%s694_s1 + $0x28] sm:$0xff] (!%p170_p3)  }
   0x8   : > { %515 = vmatpush3.bf16.msra.mxu0 (!%p170_p3), %v558_v0  ;;  %v564_v9 = vld [vmem:[%s694_s1 + $0x30] sm:$0xff] (!%p170_p3)   ;;  %v565_v10 = vld [vmem:[%s694_s1 + $0x38] sm:$0xff] (!%p170_p3)   ;;  %v493_v14 = vld [vmem:[%s695_s2] ss:$0 sm:$0xff] (!%p170_p3) }
   0x9   : > { %516 = vmatprep.subr.bf16.mxu0 (!%p170_p3), %v559_v1 }
   0xc   : > { %517 = vmatpush3.bf16.msra.mxu0 (!%p170_p3), %v559_v1 }
   0xd   : > { %518 = vmatprep.subr.bf16.mxu0 (!%p170_p3), %v560_v2 }
   0xe   : > { %s702_s18 = smov (!%p204_p4, %s489_s18), 7 }
   0xf   : > { %s490_s23 = sshll.u32 %s702_s18, 3 }
  0x10   : > { %s207_s26 = scalar_lea.vmem %s693_s0, %s490_s23  ;;  %519 = vmatpush3.bf16.msra.mxu0 %v560_v2  ;;  %s223_s17 = scalar_lea.vmem %s696_s3, %s490_s23 }
  0x11   : > { %v226_v4 = vld [vmem:[%s207_s26] sm:$0xff]  ;;  %v227_v5 = vld [vmem:[%s207_s26 + $0x8] sm:$0xff]  ;;  %520 = vmatprep.subr.bf16.mxu0 %v561_v3  ;;  %v228_v11 = vld [vmem:[%s207_s26 + $0x10] sm:$0xff] }
  0x12   : > { %v230_v6 = vpack.c.bf16 %v227_v5, %v226_v4  ;;  %v229_v12 = vld [vmem:[%s207_s26 + $0x18] sm:$0xff] }
  0x13   : > { %v231_v13 = vpack.c.bf16 %v229_v12, %v228_v11 }
  0x14   : > { %530 = vmatprep.mubr.bf16.mxu0 %v230_v6  ;;  %521 = vmatpush3.bf16.msra.mxu0 %v561_v3 }
  0x15   : > { %522 = vmatprep.subr.bf16.mxu0 %v562_v7 }
  0x18   : > { %523 = vmatpush3.bf16.msra.mxu0 %v562_v7 }
  0x19   : > { %524 = vmatprep.subr.bf16.mxu0 %v563_v8 }
  0x1c   : > { %525 = vmatpush3.bf16.msra.mxu0 %v563_v8 }
  0x1d   : > { %526 = vmatprep.subr.bf16.mxu0 %v564_v9 }
  0x20   : > { %527 = vmatpush3.bf16.msra.mxu0 %v564_v9 }
  0x21   : > { %528 = vmatprep.subr.bf16.mxu0 %v565_v10 }
  0x24   : > { %529 = vmatpush3.bf16.msra.mxu0 %v565_v10 }
  0x27   : > { %531 = vmatmul.mubr.bf16.vlgmr.msra.gmra.mrb[0].mxu0 %v231_v13 }
  0xfa   : > { %v532_v15 = vpop.f32.mrb[0].mxu0 }
  0xfb   : > { %v346_v16 = vadd.f32 %v532_v15, %v493_v14  ;;  %v337_v17 = vpop.f32.mrb[1].mxu0 }
  0xfc   : > { %v338_v18 = vadd.f32 %v493_v14, %v337_v17  ;;  %v533_v19 = vpop.f32.mrb[2].mxu0 }
  0xfd   : > { %v354_v20 = vsub.f32 0.0, %v346_v16  ;;  %v349_v21 = vadd.f32 %v533_v19, %v493_v14  ;;  %v340_v22 = vpop.f32.mrb[3].mxu0 }
  0xfe   : > { %v352_v23 = vsub.f32 0.0, %v338_v18  ;;  %v341_v24 = vadd.f32 %v493_v14, %v340_v22 }
  0xff   : > { %v360_v25 = vmul.f32 1.442695, %v354_v20  ;;  %v355_v26 = vsub.f32 0.0, %v349_v21 }
 0x100   : > { %v356_v27 = vmul.f32 1.442695, %v352_v23  ;;  %v353_v28 = vsub.f32 0.0, %v341_v24 }
 0x101   : > { %566 = vpow2.f32 %v360_v25  ;;  %v362_v29 = vmul.f32 1.442695, %v355_v26 }
 0x102   : > { %568 = vpow2.f32 %v356_v27  ;;  %v358_v30 = vmul.f32 1.442695, %v353_v28 }
 0x103   : > { %570 = vpow2.f32 %v362_v29 }
 0x104   : > { %572 = vpow2.f32 %v358_v30 }
 0x10b   : > { %v567_v31 = vpop.eup %566 }
 0x10c   : > { %v569_v32 = vpop.eup %568  ;;  %v366_v33 = vadd.f32 1.0, %v567_v31 }
 0x10d   : > { %v571_v34 = vpop.eup %570  ;;  %v364_v35 = vadd.f32 1.0, %v569_v32 }
 0x10e   : > { %v573_v36 = vpop.eup %572  ;;  %574 = vrcp.f32 %v366_v33  ;;  %v367_v37 = vadd.f32 1.0, %v571_v34 }
 0x10f   : > { %576 = vrcp.f32 %v364_v35  ;;  %v365_v38 = vadd.f32 1.0, %v573_v36 }
 0x110   : > { %578 = vrcp.f32 %v367_v37 }
 0x111   : > { %580 = vrcp.f32 %v365_v38 }
 0x118   : > { %v575_v39 = vpop.eup %574 }
 0x119   : > { %v577_v40 = vpop.eup %576  ;;  %v374_v45 = vmul.f32 %v575_v39, %v228_v11 }
 0x11a   : > { %v579_v41 = vpop.eup %578  ;;  %v372_v42 = vmul.f32 %v577_v40, %v226_v4 }
 0x11b   : > { %v581_v43 = vpop.eup %580  ;;  %v375_v46 = vmul.f32 %v579_v41, %v229_v12  ;;  %378 = vst [vmem:[%s223_s17 + $0x10] sm:$0xff] %v374_v45 }
 0x11c   : > { %376 = vst [vmem:[%s223_s17] sm:$0xff] %v372_v42  ;;  %v373_v44 = vmul.f32 %v581_v43, %v227_v5 }
 0x11d   : > { %379 = vst [vmem:[%s223_s17 + $0x18] sm:$0xff] %v375_v46 }
 0x11e   : > { %377 = vst [vmem:[%s223_s17 + $0x8] sm:$0xff] %v373_v44 }
 0x11f PF: > { %s13_s14 = sadd.s32 1, %s604_s14   ;;  %s697_s12 = smov %s600_s13 }
 0x120   : > { %p10_p5 = scmp.ge.s32.totalorder %s13_s14, 4   ;;  %s698_s13 = smov %s700_s15 }
 0x122   :  { %12 = sbr.rel (!%p10_p5) target bundleno = 2 (0x2), region = 68 }

</bundles_post_ra>
